<compile_context>
chip_gen: v5e
topology: v5e:2x2
jax: 0.10.0
libtpu: 0.0.40
codegen_flags: <defaults>
</compile_context>

<pallas_src>
import jax
import jax.numpy as jnp
from jax.experimental import pallas as pl
from jax.experimental.pallas import tpu as pltpu


def _round_up(x, m):
    return ((x + m - 1) // m) * m


def _vmem_budget_bytes():
    """~80% of physical per-core VMEM (v7x: ~51 MiB, v5e/v6e: ~102 MiB)."""
    try:
        cap = int(pltpu.get_tpu_info().vmem_capacity_bytes)
    except Exception:
        cap = 64 * 1024 * 1024          # conservative (v7x-sized) fallback
    return int(cap * 0.8)


# ---------------------------------------------------------------------------
# Per-row / resident VMEM estimates (f32) used for batch-tile sizing.
# ---------------------------------------------------------------------------
def _per_row_bytes_gather(S, E, V, Cp):
    # 2x-buffered ids + outputs, one-hot matrix, gathered emb + elementwise temps.
    return 4 * (2 * S + 2 * (Cp + S) + S * V + 3 * S * E + 2 * E + 2 * Cp + 16)


def _per_row_bytes_stream(S, E, Cp):
    return 4 * (3 * S * E + 4 * S + 2 * (Cp + S) + 2 * E + 2 * Cp + 16)


def _resident_bytes_gather(E, V, Cp):
    # table + qw + lw + lb; count 2 buffers each even for constant-index blocks.
    return 8 * (V * E + E + E * Cp + Cp)


def _resident_bytes_stream(E, Cp):
    return 8 * (E + E * Cp + Cp)


def _pick_batch_tile(B8, per_row, resident, budget):
    avail = budget - resident - (4 << 20)
    tb = min(B8, max(8, avail // per_row))
    if B8 >= 16:
        tb = min(tb, B8 // 2)        # >= 2 grid steps: feeds both v7x TensorCores
    return max(8, (tb // 8) * 8)


# ---------------------------------------------------------------------------
# Shared post-gather math: q projection, masked softmax, weighted sum, linear.
# VPU/XLU/EUP work except the final (TB, E) @ (E, Cp) MXU matmul.
# ---------------------------------------------------------------------------
def _attention_math(emb, valid, qw, qb, lw, lb, yhat_ref, attn_ref):
    # emb: (TB, S, E) f32, valid: (TB, S) bool, qw: (1, E), lw: (E, Cp), lb: (1, Cp)
    scores = jnp.sum(emb * qw, axis=-1) + qb                     # VPU mul + lane reduce
    scores = jnp.where(valid, scores, jnp.float32(-jnp.inf))     # (TB, S)
    m = jnp.max(scores, axis=1, keepdims=True)                   # (TB, 1)
    e = jnp.exp(scores - m)
    denom = jnp.sum(e, axis=1, keepdims=True)
    inv = pl.reciprocal(denom, approx=True)                      # EUP
    inv = inv * (2.0 - denom * inv)                              # Newton -> ~exact f32
    attn = e * inv                                               # (TB, S)
    attn_ref[...] = attn
    rep = jnp.sum(attn[:, :, None] * emb, axis=1)                # (TB, E) VPU + sublane reduce
    yhat_ref[...] = jnp.dot(rep, lw, preferred_element_type=jnp.float32) + lb


def _attn_gather_kernel(ids_ref, tab_ref, qw_ref, qb_ref, lw_ref, lb_ref,
                        yhat_ref, attn_ref):
    packed = ids_ref[...]                           # (TB, S) int32; < 0 == masked
    valid = packed >= 0
    TB, S = packed.shape
    V, E = tab_ref.shape
    # One-hot gather on the MXU; a masked (-1) id matches no row -> zero embedding
    # (harmless: its attention weight is forced to 0 via the -inf score anyway).
    onehot = (packed[:, :, None]
              == jax.lax.broadcasted_iota(jnp.int32, (TB, S, V), 2)).astype(jnp.float32)
    emb = jnp.dot(onehot.reshape(TB * S, V), tab_ref[...],
                  preferred_element_type=jnp.float32).reshape(TB, S, E)
    _attention_math(emb, valid, qw_ref[...], qb_ref[0], lw_ref[...], lb_ref[...],
                    yhat_ref, attn_ref)


def _attn_stream_kernel(emb_ref, mask_ref, qw_ref, qb_ref, lw_ref, lb_ref,
                        yhat_ref, attn_ref):
    _attention_math(emb_ref[...], mask_ref[...] != 0, qw_ref[...], qb_ref[0],
                    lw_ref[...], lb_ref[...], yhat_ref, attn_ref)


# ---------------------------------------------------------------------------
# Wrapper
# ---------------------------------------------------------------------------
def attention_model_forward(x_tokens, mask, embeddings, q_weight, q_bias,
                            lin_weight, lin_bias, *, batch_tile=None,
                            force_streamed_embeddings=False):
    """Forward pass of `attention_model`.

    x_tokens: (seq, batch) int token ids (PyTorch layout); mask: (batch, seq) bool.
    q_weight: (1, emb), q_bias: (1,), lin_weight: (nb_class, emb),
    lin_bias: (nb_class,) -- same shapes as the PyTorch nn.Linear parameters.
    Returns (yhat (batch, nb_class), attention (batch, seq)).
    """
    V, E = embeddings.shape
    C = lin_weight.shape[0]
    Cp = _round_up(C, 128)                       # lane-dense yhat store
    S, B = x_tokens.shape
    B8 = _round_up(B, 8)
    budget = _vmem_budget_bytes()

    qw = q_weight.astype(jnp.float32).reshape(1, E)
    qb = q_bias.astype(jnp.float32).reshape(1)
    lw = jnp.pad(lin_weight.astype(jnp.float32), ((0, Cp - C), (0, 0))).T    # (E, Cp)
    lb = jnp.pad(lin_bias.astype(jnp.float32), (0, Cp - C)).reshape(1, Cp)

    res_g = _resident_bytes_gather(E, V, Cp)
    row_g = _per_row_bytes_gather(S, E, V, Cp)
    use_gather = (not force_streamed_embeddings and V <= 4096
                  and res_g + 8 * row_g + (4 << 20) <= budget)

    vmem = pltpu.MemorySpace.VMEM
    smem = pltpu.MemorySpace.SMEM

    if use_gather:
        # Primary path: stream only int32 ids; table resident in VMEM.
        tab = embeddings.astype(jnp.float32)                                 # (V, E)
        # Pack the mask into the id sign: masked -> -1 (no mask DMA needed).
        ids = jnp.where(mask, x_tokens.T.astype(jnp.int32), jnp.int32(-1))   # (B, S)
        TB = batch_tile or _pick_batch_tile(B8, row_g, res_g, budget)
        B_pad = _round_up(B, TB)
        if B_pad != B:
            ids = jnp.pad(ids, ((0, B_pad - B), (0, 0)))    # pad rows: id 0 (valid, sliced off)
        grid = (B_pad // TB,)
        vmem_limit = int(min(budget, max(32 << 20, res_g + TB * row_g + (4 << 20))))
        in_specs = [
            pl.BlockSpec((TB, S), lambda b: (b, 0)),                           # ids (streamed)
            pl.BlockSpec((V, E), lambda b: (0, 0), memory_space=vmem),         # table (resident)
            pl.BlockSpec((1, E), lambda b: (0, 0), memory_space=vmem),         # qw row
            pl.BlockSpec(memory_space=smem),                                   # qb scalar
            pl.BlockSpec((E, Cp), lambda b: (0, 0), memory_space=vmem),        # lw
            pl.BlockSpec((1, Cp), lambda b: (0, 0), memory_space=vmem),        # lb
        ]
        operands = (ids, tab, qw, qb, lw, lb)
        kernel = _attn_gather_kernel
    else:
        # Fallback (huge vocab): gather in the wrapper, stream the UNPADDED
        # (B, S, E) f32 activation (E as full last array dim -> legal block).
        embedded = jnp.take(embeddings.astype(jnp.float32), x_tokens.T, axis=0)  # (B, S, E)
        mask_i = mask.astype(jnp.int32)
        res_s = _resident_bytes_stream(E, Cp)
        row_s = _per_row_bytes_stream(S, E, Cp)
        TB = batch_tile or _pick_batch_tile(B8, row_s, res_s, budget)
        B_pad = _round_up(B, TB)
        if B_pad != B:
            embedded = jnp.pad(embedded, ((0, B_pad - B), (0, 0), (0, 0)))
            mask_i = jnp.pad(mask_i, ((0, B_pad - B), (0, 0)), constant_values=1)
        grid = (B_pad // TB,)
        vmem_limit = int(min(budget, max(32 << 20, res_s + TB * row_s + (4 << 20))))
        in_specs = [
            pl.BlockSpec((TB, S, E), lambda b: (b, 0, 0)),                     # embedded
            pl.BlockSpec((TB, S), lambda b: (b, 0)),                           # mask
            pl.BlockSpec((1, E), lambda b: (0, 0), memory_space=vmem),
            pl.BlockSpec(memory_space=smem),
            pl.BlockSpec((E, Cp), lambda b: (0, 0), memory_space=vmem),
            pl.BlockSpec((1, Cp), lambda b: (0, 0), memory_space=vmem),
        ]
        operands = (embedded, mask_i, qw, qb, lw, lb)
        kernel = _attn_stream_kernel

    out_specs = (
        pl.BlockSpec((TB, Cp), lambda b: (b, 0)),      # yhat, class dim padded to 128 (lane-dense)
        # attn last dim is S; for S < 128 this lowers to masked stores, but the
        # traffic is tiny and the layout matches the module; lane-dense for S >= 128.
        pl.BlockSpec((TB, S), lambda b: (b, 0)),
    )

    yhat_p, attn_p = pl.pallas_call(
        kernel,
        grid=grid,
        out_shape=(jax.ShapeDtypeStruct((B_pad, Cp), jnp.float32),
                   jax.ShapeDtypeStruct((B_pad, S), jnp.float32)),
        in_specs=in_specs,
        out_specs=out_specs,
        compiler_params=pltpu.CompilerParams(
            dimension_semantics=("parallel",),
            vmem_limit_bytes=vmem_limit),
    )(*operands)

    return yhat_p[:B, :C], attn_p[:B]


def _reference_forward(x_tokens, mask, embeddings, q_weight, q_bias,
                       lin_weight, lin_bias):
    embedded = jnp.transpose(jnp.take(embeddings, x_tokens, axis=0), (1, 0, 2))
    scores = jnp.einsum('bse,oe->bso', embedded, q_weight)[..., 0] + q_bias[0]
    scores = jnp.where(mask, scores, -jnp.inf)
    attn = jax.nn.softmax(scores, axis=1)
    rep = jnp.sum(embedded * attn[:, :, None], axis=1)
    yhat = rep @ lin_weight.T + lin_bias
    return yhat, attn


if __name__ == "__main__":
    emb_size = 50
    nb_class = 2
    vocab_size = 20
    seq_len = 8
    batch = 2

    key = jax.random.PRNGKey(0)
    k_emb, k_x, k_qw, k_qb, k_lw, k_lb = jax.random.split(key, 6)

    # Deterministic "pretrained" embedding table + Linear params.
    embeddings = jax.random.normal(k_emb, (vocab_size, emb_size), jnp.float32)
    q_weight = 0.1 * jax.random.normal(k_qw, (1, emb_size), jnp.float32)
    q_bias = 0.1 * jax.random.normal(k_qb, (1,), jnp.float32)
    lin_weight = 0.1 * jax.random.normal(k_lw, (nb_class, emb_size), jnp.float32)
    lin_bias = 0.1 * jax.random.normal(k_lb, (nb_class,), jnp.float32)

    # Inputs: token ids (seq, batch), padding mask (batch, seq).
    x_tokens = jax.random.randint(k_x, (seq_len, batch), 0, vocab_size, jnp.int32)
    lengths = jnp.array([6, 4], dtype=jnp.int32)             # x_lengths (unused by forward)
    mask = jnp.arange(seq_len)[None, :] < lengths[:, None]   # (batch, seq) bool

    y_ref, a_ref = _reference_forward(
        x_tokens, mask, embeddings, q_weight, q_bias, lin_weight, lin_bias)

    # Primary path: in-kernel one-hot gather with VMEM-resident table.
    yhat, attn = attention_model_forward(
        x_tokens, mask, embeddings, q_weight, q_bias, lin_weight, lin_bias)
    jax.block_until_ready((yhat, attn))
    assert yhat.shape == (batch, nb_class) and attn.shape == (batch, seq_len)
    assert jnp.allclose(attn, a_ref, atol=1e-4), "attention mismatch (gather path)"
    assert jnp.allclose(yhat, y_ref, atol=1e-3), "yhat mismatch (gather path)"

    # Fallback path (large-vocab regime): streamed unpadded activation.
    yhat_s, attn_s = attention_model_forward(
        x_tokens, mask, embeddings, q_weight, q_bias, lin_weight, lin_bias,
        force_streamed_embeddings=True)
    jax.block_until_ready((yhat_s, attn_s))
    assert jnp.allclose(attn_s, a_ref, atol=1e-4), "attention mismatch (stream path)"
    assert jnp.allclose(yhat_s, y_ref, atol=1e-3), "yhat mismatch (stream path)"

    print("KERNEL_OK")
</pallas_src>

<mosaic_0001>
module attributes {stable_mosaic.version = 11 : i64} {
  func.func @_attn_gather_kernel(%arg0: i32, %arg1: memref<8x8xi32, #tpu.memory_space<vmem>>, %arg2: memref<20x50xf32, #tpu.memory_space<vmem>>, %arg3: memref<1x50xf32, #tpu.memory_space<vmem>>, %arg4: memref<1xf32, #tpu.memory_space<smem>>, %arg5: memref<50x128xf32, #tpu.memory_space<vmem>>, %arg6: memref<1x128xf32, #tpu.memory_space<vmem>>, %arg7: memref<8x128xf32, #tpu.memory_space<vmem>>, %arg8: memref<8x8xf32, #tpu.memory_space<vmem>>) attributes {dimension_semantics = [#tpu.dimension_semantics<parallel>], iteration_bounds = array<i64: 1>, scalar_prefetch = 0 : i64, scratch_operands = 0 : i64, tpu.core_type = #tpu.core_type<tc>, window_params = [{transform_indices = @transform_0, window_bounds = array<i64: 8, 8>}, {pipeline_mode = #tpu.pipeline_mode<synchronous>, transform_indices = @transform_1, window_bounds = array<i64: 20, 50>}, {pipeline_mode = #tpu.pipeline_mode<synchronous>, transform_indices = @transform_2, window_bounds = array<i64: 1, 50>}, {transform_indices = @transform_3, window_bounds = array<i64: 1>}, {pipeline_mode = #tpu.pipeline_mode<synchronous>, transform_indices = @transform_4, window_bounds = array<i64: 50, 128>}, {pipeline_mode = #tpu.pipeline_mode<synchronous>, transform_indices = @transform_5, window_bounds = array<i64: 1, 128>}, {transform_indices = @transform_6, window_bounds = array<i64: 8, 128>}, {transform_indices = @transform_7, window_bounds = array<i64: 8, 8>}]} {
    %c0 = arith.constant 0 : index
    %c0_0 = arith.constant 0 : index
    %0 = vector.load %arg1[%c0, %c0_0] : memref<8x8xi32, #tpu.memory_space<vmem>>, vector<8x8xi32>
    %c0_i32 = arith.constant 0 : i32
    %1 = vector.broadcast %c0_i32 : i32 to vector<8x8xi32>
    %2 = arith.cmpi sge, %0, %1 : vector<8x8xi32>
    %3 = vector.shape_cast %0 : vector<8x8xi32> to vector<8x8x1xi32>
    %4 = tpu.iota {dimensions = array<i32: 2>} : vector<8x8x20xi32>
    %5 = vector.broadcast %3 : vector<8x8x1xi32> to vector<8x8x20xi32>
    %6 = arith.cmpi eq, %5, %4 : vector<8x8x20xi32>
    %7 = arith.extui %6 : vector<8x8x20xi1> to vector<8x8x20xi32>
    %8 = arith.sitofp %7 : vector<8x8x20xi32> to vector<8x8x20xf32>
    %9 = vector.shape_cast %8 : vector<8x8x20xf32> to vector<64x20xf32>
    %c0_1 = arith.constant 0 : index
    %c0_2 = arith.constant 0 : index
    %10 = vector.load %arg2[%c0_1, %c0_2] : memref<20x50xf32, #tpu.memory_space<vmem>>, vector<20x50xf32>
    %cst = arith.constant dense<0.000000e+00> : vector<64x50xf32>
    %11 = tpu.matmul %9, %10, %cst {dimension_numbers = #tpu.dot_dimension_numbers<[1], [0], [0], [1], [0, 0, 1, 1], [], []>} : vector<64x20xf32>, vector<20x50xf32>, vector<64x50xf32> -> vector<64x50xf32>
    %12 = vector.shape_cast %11 : vector<64x50xf32> to vector<8x8x50xf32>
    %c0_3 = arith.constant 0 : index
    %c0_4 = arith.constant 0 : index
    %13 = vector.load %arg3[%c0_3, %c0_4] : memref<1x50xf32, #tpu.memory_space<vmem>>, vector<1x50xf32>
    %c0_5 = arith.constant 0 : index
    %14 = memref.load %arg4[%c0_5] : memref<1xf32, #tpu.memory_space<smem>>
    %c0_6 = arith.constant 0 : index
    %c0_7 = arith.constant 0 : index
    %15 = vector.load %arg5[%c0_6, %c0_7] : memref<50x128xf32, #tpu.memory_space<vmem>>, vector<50x128xf32>
    %c0_8 = arith.constant 0 : index
    %c0_9 = arith.constant 0 : index
    %16 = vector.load %arg6[%c0_8, %c0_9] : memref<1x128xf32, #tpu.memory_space<vmem>>, vector<1x128xf32>
    %17 = vector.shape_cast %13 : vector<1x50xf32> to vector<1x1x50xf32>
    %18 = vector.broadcast %17 : vector<1x1x50xf32> to vector<8x8x50xf32>
    %19 = arith.mulf %12, %18 : vector<8x8x50xf32>
    %cst_10 = arith.constant dense<0.000000e+00> : vector<8x8xf32>
    %20 = vector.multi_reduction <add>, %19, %cst_10 [2] : vector<8x8x50xf32> to vector<8x8xf32>
    %21 = vector.broadcast %14 : f32 to vector<8x8xf32>
    %22 = arith.addf %20, %21 : vector<8x8xf32>
    %cst_11 = arith.constant 0xFF800000 : f32
    %23 = vector.broadcast %cst_11 : f32 to vector<8x8xf32>
    %24 = arith.select %2, %22, %23 : vector<8x8xi1>, vector<8x8xf32>
    %cst_12 = arith.constant dense<0xFF800000> : vector<8xf32>
    %25 = vector.multi_reduction <maximumf>, %24, %cst_12 [1] : vector<8x8xf32> to vector<8xf32>
    %26 = vector.shape_cast %25 : vector<8xf32> to vector<8x1xf32>
    %27 = vector.broadcast %26 : vector<8x1xf32> to vector<8x8xf32>
    %28 = arith.subf %24, %27 : vector<8x8xf32>
    %29 = math.exp %28 : vector<8x8xf32>
    %cst_13 = arith.constant dense<0.000000e+00> : vector<8xf32>
    %30 = vector.multi_reduction <add>, %29, %cst_13 [1] : vector<8x8xf32> to vector<8xf32>
    %31 = vector.shape_cast %30 : vector<8xf32> to vector<8x1xf32>
    %32 = tpu.reciprocal %31 {approx = true} : vector<8x1xf32> -> vector<8x1xf32>
    %33 = arith.mulf %31, %32 : vector<8x1xf32>
    %cst_14 = arith.constant 2.000000e+00 : f32
    %34 = vector.broadcast %cst_14 : f32 to vector<8x1xf32>
    %35 = arith.subf %34, %33 : vector<8x1xf32>
    %36 = arith.mulf %32, %35 : vector<8x1xf32>
    %37 = vector.broadcast %36 : vector<8x1xf32> to vector<8x8xf32>
    %38 = arith.mulf %29, %37 : vector<8x8xf32>
    %c0_15 = arith.constant 0 : index
    %c0_16 = arith.constant 0 : index
    %39 = vector.load %arg8[%c0_15, %c0_16] : memref<8x8xf32, #tpu.memory_space<vmem>>, vector<8x8xf32>
    tpu.vector_store %arg8[%c0_15, %c0_16], %38 {strides = array<i32>} : memref<8x8xf32, #tpu.memory_space<vmem>>, vector<8x8xf32>,
    %40 = vector.shape_cast %38 : vector<8x8xf32> to vector<8x8x1xf32>
    %41 = vector.broadcast %40 : vector<8x8x1xf32> to vector<8x8x50xf32>
    %42 = arith.mulf %41, %12 : vector<8x8x50xf32>
    %cst_17 = arith.constant dense<0.000000e+00> : vector<8x50xf32>
    %43 = vector.multi_reduction <add>, %42, %cst_17 [1] : vector<8x8x50xf32> to vector<8x50xf32>
    %cst_18 = arith.constant dense<0.000000e+00> : vector<8x128xf32>
    %44 = tpu.matmul %43, %15, %cst_18 {dimension_numbers = #tpu.dot_dimension_numbers<[1], [0], [0], [1], [0, 0, 1, 1], [], []>} : vector<8x50xf32>, vector<50x128xf32>, vector<8x128xf32> -> vector<8x128xf32>
    %45 = vector.broadcast %16 : vector<1x128xf32> to vector<8x128xf32>
    %46 = arith.addf %44, %45 : vector<8x128xf32>
    %c0_19 = arith.constant 0 : index
    %c0_20 = arith.constant 0 : index
    %47 = vector.load %arg7[%c0_19, %c0_20] : memref<8x128xf32, #tpu.memory_space<vmem>>, vector<8x128xf32>
    tpu.vector_store %arg7[%c0_19, %c0_20], %46 {strides = array<i32>} : memref<8x128xf32, #tpu.memory_space<vmem>>, vector<8x128xf32>,
    return
  }
  func.func @transform_0(%arg0: i32) -> (i32, i32) {
    %c0_i32 = arith.constant 0 : i32
    %c0_i32_0 = arith.constant 0 : i32
    return %arg0, %c0_i32 : i32, i32
  }
  func.func @transform_1(%arg0: i32) -> (i32, i32) {
    %c0_i32 = arith.constant 0 : i32
    %c0_i32_0 = arith.constant 0 : i32
    %c0_i32_1 = arith.constant 0 : i32
    return %c0_i32, %c0_i32_0 : i32, i32
  }
  func.func @transform_2(%arg0: i32) -> (i32, i32) {
    %c0_i32 = arith.constant 0 : i32
    %c0_i32_0 = arith.constant 0 : i32
    %c0_i32_1 = arith.constant 0 : i32
    return %c0_i32, %c0_i32_0 : i32, i32
  }
  func.func @transform_3(%arg0: i32) -> i32 {
    %c0_i32 = arith.constant 0 : i32
    %c0_i32_0 = arith.constant 0 : i32
    return %c0_i32 : i32
  }
  func.func @transform_4(%arg0: i32) -> (i32, i32) {
    %c0_i32 = arith.constant 0 : i32
    %c0_i32_0 = arith.constant 0 : i32
    %c0_i32_1 = arith.constant 0 : i32
    return %c0_i32, %c0_i32_0 : i32, i32
  }
  func.func @transform_5(%arg0: i32) -> (i32, i32) {
    %c0_i32 = arith.constant 0 : i32
    %c0_i32_0 = arith.constant 0 : i32
    %c0_i32_1 = arith.constant 0 : i32
    return %c0_i32, %c0_i32_0 : i32, i32
  }
  func.func @transform_6(%arg0: i32) -> (i32, i32) {
    %c0_i32 = arith.constant 0 : i32
    %c0_i32_0 = arith.constant 0 : i32
    return %arg0, %c0_i32 : i32, i32
  }
  func.func @transform_7(%arg0: i32) -> (i32, i32) {
    %c0_i32 = arith.constant 0 : i32
    %c0_i32_0 = arith.constant 0 : i32
    return %arg0, %c0_i32 : i32, i32
  }
}

</mosaic_0001>

<bundles_post_ra>
// kernel: tpu_custom_call.1
= control target key start
LH: loop header
LB: loop body
LE: loop exit
PB: predicated region body
PF: predicated region fallthrough
CT: control target
= control target key end

     0   :  { %14 = vsyncpa [#allocation4], 0  ;;  %s877_s0 = inlined_call_operand.hbm [shape: s32[8,8], index: 0, kind: input, shape index: {}]   ;;  %s878_s1 = inlined_call_operand.hbm [shape: f32[20,50], index: 1, kind: input, shape index: {}]   ;;  %s879_s2 = inlined_call_operand.vmem [shape: f32[1,50], index: 2, kind: input, shape index: {}]   ;;  %s880_s3 = inlined_call_operand.<no memory space> [shape: f32[1], index: 3, kind: input, shape index: {}]   ;;  %s881_s4 = inlined_call_operand.hbm [shape: f32[50,128], index: 4, kind: input, shape index: {}]   ;;  %s882_s5 = inlined_call_operand.vmem [shape: f32[1,128], index: 5, kind: input, shape index: {}]   ;;  %s883_s6 = inlined_call_operand.hbm [shape: f32[8,128], index: 6, kind: output, shape index: {0}]   ;;  %s884_s7 = inlined_call_operand.hbm [shape: f32[8,8], index: 7, kind: output, shape index: {1}]  }
   0x1   :  { %15 = vsyncpa [#allocation7], 0 }
   0x2   :  { %16 = vsyncpa [#allocation5], 0  ;;  %s33_s26 = sshll.u32 %s878_s1, 4  ;;  %s34_s26 = int_to_ptr.hbm [resolvable:$true] %s33_s26 }
   0x3   :  { %17 = vsyncpa [#allocation11], 0  ;;  %s702_s27 = smov [#allocation6]   ;;  %s23_s8 = sshll.u32 %s877_s0, 4  ;;  %s24_s8 = int_to_ptr.hbm [resolvable:$true] %s23_s8 }
   0x4   :  { %s35_s28 = sshll.u32 %s702_s27, 4  ;;  %s703_s9 = smov 128   ;;  %s36_s28 = int_to_ptr.vmem [resolvable:$true] %s35_s28 }
   0x5   :  { %s704_s10 = smov 8   ;;  %s705_s11 = smov [#allocation3]  }
   0x6   :  { %41 = dma.hbm_to_vmem [thread:$0]  %s34_s26, 384, %s36_s28, [#allocation7], %s703_s9, %s703_s9, %s704_s10  }
   0x7   :  { %s25_s12 = sshll.u32 %s705_s11, 4  ;;  %s50_s15 = sshll.u32 %s881_s4, 4  ;;  %s26_s12 = int_to_ptr.vmem [resolvable:$true] %s25_s12  ;;  %s51_s15 = int_to_ptr.hbm [resolvable:$true] %s50_s15 }
   0x8   :  { %28 = dma.hbm_to_vmem [thread:$0]  %s24_s8, 128, %s26_s12, [#allocation4]  }
   0x9   :  { %s706_s1 = smov [#allocation8]  }
   0xa   :  { %s52_s16 = sshll.u32 %s706_s1, 4  ;;  %s53_s16 = int_to_ptr.vmem [resolvable:$true] %s52_s16 }
   0xb   :  { %58 = dma.hbm_to_vmem [thread:$0]  %s51_s15, 896, %s53_s16, [#allocation7], %s703_s9, %s703_s9, %s704_s10  }
   0xc   :  { %694 = dma.done.wait [#allocation4], 128  }
   0xd   :  { %695 = vsyncadd [#allocation4], 4294967168 }
   0xe   :  { %696 = dma.done.wait [#allocation7], 1280  }
   0xf   :  { %697 = vsyncadd [#allocation7], 4294966016  ;;  %v76_v0 = vlaneseq  ;;  %vm185_vm0 = vcmask 1043456   ;;  %v759_v2 = vld [vmem:[#allocation3] sm:$0xff]  ;;  %v159_v3 = vld [vmem:[#allocation6 + $0x10] sm:$0xf]  ;;  %v276_v60 = vstv %s880_s3 }
  0x10   :  { %v158_v4 = vld [vmem:[#allocation6 + $0x8] sm:$0xff]  ;;  %v103_v5 = vperm.slane %v759_v2, 4  ;;  %v96_v6 = vperm.slane %v759_v2, 3  ;;  %551 = vmatpush.msk.msra.mxu2 %vm185_vm0, %v159_v3  ;;  %540 = vmatpush.msk.msra.mxu0 %vm185_vm0, %v159_v3  ;;  %v82_v7 = vperm.slane %v759_v2, 1  ;;  %v117_v8 = vperm.slane %v759_v2, 6  ;;  %v157_v13 = vld [vmem:[#allocation6] sm:$0xff] }
  0x11   :  { %v77_v1 = vshrl.u32 %v76_v0, 7  ;;  %552 = vmatpush.msk.msra.mxu3 %vm185_vm0, %v159_v3  ;;  %v75_v9 = vperm.slane %v759_v2, 0  ;;  %v110_v10 = vperm.slane %v759_v2, 5  ;;  %v89_v11 = vperm.slane %v759_v2, 2  ;;  %v568_v33 = vld [vmem:[%s879_s2] ss:$0 sm:$0xff] }
  0x12   :  { %553 = vmatpush.msra.mxu2 %v158_v4  ;;  %203 = vmatpush.msra.mxu0 %v158_v4  ;;  %v124_v12 = vperm.slane %v759_v2, 7  ;;  %v769_v14 = vand.u32 127, %v76_v0  ;;  %vm160_vm1 = vcmask 162816   ;;  %v707_v18 = vmov 0.0   ;;  %s708_s3 = smov [#allocation10]   ;;  %s516_s21 = sshll.u32 %s884_s7, 4  ;;  %s517_s21 = int_to_ptr.hbm [resolvable:$true] %s516_s21 }
  0x13   :  { %566 = vset.pattern.permute.xlu1 %v77_v1  ;;  %565 = vset.pattern.permute.xlu0 %v77_v1  ;;  %vm251_vm10 = vcmask 408576   ;;  %vm301_vm11 = vcmask 1041409   ;;  %vm303_vm12 = vcmask 1042434   ;;  %vm305_vm13 = vcmask 1043459   ;;  %s514_s18 = sshll.u32 %s708_s3, 4  ;;  %s709_s24 = smov [#allocation9]   ;;  %s515_s18 = int_to_ptr.vmem [resolvable:$true] %s514_s18 }
  0x14   :  { %567 = vset.pattern.permute.xlu2 %v77_v1  ;;  %554 = vmatpush.msra.mxu3 %v158_v4  ;;  %vm307_vm14 = vcmask 1044484   ;;  %vm309_vm15 = vcmask 1045509   ;;  %vm311_vm0 = vcmask 1046534   ;;  %s503_s25 = sshll.u32 %s709_s24, 4  ;;  %s505_s28 = sshll.u32 %s883_s6, 4  ;;  %s504_s25 = int_to_ptr.vmem [resolvable:$true] %s503_s25  ;;  %s506_s28 = int_to_ptr.hbm [resolvable:$true] %s505_s28 }
  0x15   :  { %555 = vmatpush.msra.mxu2 %v157_v13  ;;  %204 = vmatpush.msra.mxu0 %v157_v13 }
  0x16   :  { %556 = vmatpush.msra.mxu3 %v157_v13 }
  0x1b   :  { %108 = vperm.xlu1 %566, %v103_v5   ;;  %101 = vperm.xlu0 %565, %v96_v6  }
  0x1c   :  { %87 = vperm.xlu2 %567, %v82_v7  }
  0x23   :  { %122 = vperm.xlu1 %566, %v117_v8   ;;  %80 = vperm.xlu0 %565, %v75_v9  }
  0x24   :  { %115 = vperm.xlu2 %567, %v110_v10  }
  0x2b   :  { %94 = vperm.xlu1 %566, %v89_v11   ;;  %129 = vperm.xlu0 %565, %v124_v12  }
  0x76   :  { %v88_v15 = vpop.permute.xlu2 %87 }
  0x77   :  { %vm134_vm6 = vcmp.eq.s32.totalorder %v88_v15, %v769_v14 }
  0x78   :  { %v533_v26 = vsel %vm134_vm6, 1.0, %v707_v18 }
  0x7e   :  { %v116_v25 = vpop.permute.xlu2 %115 }
  0x7f   :  { %vm138_vm7 = vcmp.eq.s32.totalorder %v116_v25, %v769_v14 }
  0x80   :  { %v537_v27 = vsel %vm138_vm7, 1.0, %v707_v18 }
  0x8d   :  { %v109_v16 = vpop.permute.xlu1 %108  ;;  %v102_v17 = vpop.permute.xlu0 %101 }
  0x8e   :  { %vm136_vm2 = vcmp.eq.s32.totalorder %v102_v17, %v769_v14  ;;  %vm137_vm3 = vcmp.eq.s32.totalorder %v109_v16, %v769_v14 }
  0x8f   :  { %v535_v19 = vsel %vm136_vm2, 1.0, %v707_v18  ;;  %v536_v20 = vsel %vm137_vm3, 1.0, %v707_v18  ;;  %vm74_vm2 = vcmp.ge.s32.totalorder %v759_v2, 0  ;;  %vm317_vm3 = vcmask 64512  }
  0x90   :  { %544 = vmatmul.msk.f32.vlgmr.msra.gmra.mxu2 %vm160_vm1, %v535_v19 }
  0x95   :  { %v123_v21 = vpop.permute.xlu1 %122  ;;  %v81_v22 = vpop.permute.xlu0 %80 }
  0x96   :  { %vm139_vm4 = vcmp.eq.s32.totalorder %v123_v21, %v769_v14  ;;  %vm133_vm5 = vcmp.eq.s32.totalorder %v81_v22, %v769_v14 }
  0x97   :  { %v538_v23 = vsel %vm139_vm4, 1.0, %v707_v18  ;;  %v532_v24 = vsel %vm133_vm5, 1.0, %v707_v18  ;;  %vm473_vm4 = vcmask 1041408  }
  0x98   :  { %541 = vmatmul.msk.f32.vlgmr.msra.gmra.mxu0 %vm160_vm1, %v532_v24  ;;  %545 = vmatmul.msk.f32.gmra.mxu2 %vm160_vm1, %v536_v20 }
  0x99   :  { %547 = vmatmul.msk.f32.vlgmr.msra.gmra.mxu3 %vm160_vm1, %v538_v23 }
  0x9d   :  { %v130_v28 = vpop.permute.xlu0 %129  ;;  %v95_v30 = vpop.permute.xlu1 %94 }
  0x9e   :  { %vm140_vm8 = vcmp.eq.s32.totalorder %v130_v28, %v769_v14  ;;  %vm135_vm9 = vcmp.eq.s32.totalorder %v95_v30, %v769_v14 }
  0x9f   :  { %v539_v29 = vsel %vm140_vm8, 1.0, %v707_v18  ;;  %v534_v31 = vsel %vm135_vm9, 1.0, %v707_v18 }
  0xa0   :  { %542 = vmatmul.msk.f32.gmra.mxu0 %vm160_vm1, %v533_v26  ;;  %546 = vmatmul.msk.f32.gmra.mxu2 %vm160_vm1, %v537_v27 }
  0xa1   :  { %548 = vmatmul.msk.f32.gmra.mxu3 %vm160_vm1, %v539_v29 }
  0xa8   :  { %543 = vmatmul.msk.f32.gmra.mxu0 %vm160_vm1, %v534_v31  ;;  %vm313_vm1 = vcmask 1047559  }
 0x113   :  { %v787_v32 = vpop.f32.mrf.mxu2 }
 0x114   :  { %v246_v38 = vmul.f32 %v568_v33, %v787_v32 }
 0x115   :  { %v792_v34 = vpop.f32.mrf.mxu0 }
 0x116   :  { %v243_v35 = vmul.f32 %v568_v33, %v792_v34  ;;  %v261_v42 = vsel %vm251_vm10, %v246_v38, 0.0 }
 0x118   :  { %v252_v36 = vsel %vm251_vm10, %v243_v35, 0.0 }
 0x119   :  { %253 = vadd.xlane.f32.xlu2 %v252_v36 }
 0x11b   :  { %v796_v37 = vpop.f32.mrf.mxu2 }
 0x11c   :  { %v802_v41 = vpop.f32.mrf.mxu3  ;;  %v247_v45 = vmul.f32 %v568_v33, %v796_v37 }
 0x11d   :  { %v799_v39 = vpop.f32.mrf.mxu0  ;;  %v249_v54 = vmul.f32 %v568_v33, %v802_v41 }
 0x11e   :  { %v244_v40 = vmul.f32 %v568_v33, %v799_v39  ;;  %v264_v49 = vsel %vm251_vm10, %v247_v45, 0.0 }
 0x11f   :  { %v270_v56 = vsel %vm251_vm10, %v249_v54, 0.0 }
 0x120   :  { %v255_v43 = vsel %vm251_vm10, %v244_v40, 0.0 }
 0x121   :  { %262 = vadd.xlane.f32.xlu2 %v261_v42  ;;  %256 = vadd.xlane.f32.xlu0 %v255_v43 }
 0x123   :  { %v806_v44 = vpop.f32.mrf.mxu2 }
 0x124   :  { %v248_v46 = vmul.f32 %v568_v33, %v806_v44  ;;  %v816_v52 = vpop.f32.mrf.mxu3 }
 0x125   :  { %v810_v47 = vpop.f32.mrf.mxu0  ;;  %v250_v53 = vmul.f32 %v568_v33, %v816_v52 }
 0x126   :  { %v245_v48 = vmul.f32 %v568_v33, %v810_v47  ;;  %v267_v50 = vsel %vm251_vm10, %v248_v46, 0.0 }
 0x127   :  { %v273_v55 = vsel %vm251_vm10, %v250_v53, 0.0 }
 0x128   :  { %v258_v51 = vsel %vm251_vm10, %v245_v48, 0.0 }
 0x129   :  { %265 = vadd.xlane.f32.xlu2 %v264_v49  ;;  %268 = vadd.xlane.f32.xlu0 %v267_v50 }
 0x12a   :  { %259 = vadd.xlane.f32.xlu1 %v258_v51 }
 0x131   :  { %274 = vadd.xlane.f32.xlu2 %v273_v55  ;;  %v238_v55 = vld [vmem:[#allocation8 + $0x30] sm:$0x3] }
 0x132   :  { %271 = vadd.xlane.f32.xlu1 %v270_v56  ;;  %549 = vmatpush.msk.msra.mxu1 %vm473_vm4, %v238_v55 }
 0x18c   :  { %v254_v57 = vpop.xlane.xlu2 %253 }
 0x18d   :  { %v277_v62 = vadd.f32 %v276_v60, %v254_v57  ;;  %v237_v57 = vld [vmem:[#allocation8 + $0x28] sm:$0xff] }
 0x18e   :  { %487 = vmatpush.msra.mxu1 %v237_v57 }
 0x18f   :  { %v293_v5 = vperm.slane %v277_v62, %v769_v14  ;;  %v234_v62 = vld [vmem:[#allocation8 + $0x10] sm:$0xff] }
 0x194   :  { %v263_v58 = vpop.xlane.xlu2 %262  ;;  %v257_v59 = vpop.xlane.xlu0 %256 }
 0x195   :  { %v278_v61 = vadd.f32 %v276_v60, %v257_v59  ;;  %v280_v0 = vadd.f32 %v276_v60, %v263_v58  ;;  %v236_v59 = vld [vmem:[#allocation8 + $0x20] sm:$0xff] }
 0x196   :  { %488 = vmatpush.msra.mxu1 %v236_v59 }
 0x197   :  { %v294_v1 = vperm.slane %v278_v61, %v769_v14  ;;  %v296_v9 = vperm.slane %v280_v0, %v769_v14 }
 0x199   :  { %v302_v10 = vsel %vm301_vm11, %v294_v1, %v293_v5 }
 0x19c   :  { %v266_v63 = vpop.xlane.xlu2 %265  ;;  %v269_v8 = vpop.xlane.xlu0 %268 }
 0x19d   :  { %v260_v3 = vpop.xlane.xlu1 %259  ;;  %v281_v6 = vadd.f32 %v276_v60, %v266_v63  ;;  %v282_v13 = vadd.f32 %v276_v60, %v269_v8  ;;  %v233_v63 = vld [vmem:[#allocation8 + $0x8] sm:$0xff] }
 0x19e   :  { %v279_v4 = vadd.f32 %v276_v60, %v260_v3  ;;  %v232_v3 = vld [vmem:[#allocation8] sm:$0xff] }
 0x19f   :  { %v297_v15 = vperm.slane %v281_v6, %v769_v14  ;;  %v298_v21 = vperm.slane %v282_v13, %v769_v14 }
 0x1a0   :  { %v295_v7 = vperm.slane %v279_v4, %v769_v14 }
 0x1a2   :  { %v304_v11 = vsel %vm303_vm12, %v295_v7, %v302_v10 }
 0x1a3   :  { %v306_v12 = vsel %vm305_vm13, %v296_v9, %v304_v11 }
 0x1a4   :  { %v275_v16 = vpop.xlane.xlu2 %274  ;;  %v308_v20 = vsel %vm307_vm14, %v297_v15, %v306_v12 }
 0x1a5   :  { %v272_v17 = vpop.xlane.xlu1 %271  ;;  %v284_v18 = vadd.f32 %v276_v60, %v275_v16  ;;  %v310_v24 = vsel %vm309_vm15, %v298_v21, %v308_v20 }
 0x1a6   :  { %v283_v19 = vadd.f32 %v276_v60, %v272_v17  ;;  %v235_v60 = vld [vmem:[#allocation8 + $0x18] sm:$0xff] }
 0x1a7   :  { %v300_v22 = vperm.slane %v284_v18, %v769_v14  ;;  %489 = vmatpush.msra.mxu1 %v235_v60 }
 0x1a8   :  { %v299_v23 = vperm.slane %v283_v19, %v769_v14 }
 0x1a9   :  { %490 = vmatpush.msra.mxu1 %v234_v62 }
 0x1aa   :  { %v312_v25 = vsel %vm311_vm0, %v299_v23, %v310_v24 }
 0x1ab   :  { %v314_v26 = vsel %vm313_vm1, %v300_v22, %v312_v25  ;;  %491 = vmatpush.msra.mxu1 %v233_v63 }
 0x1ac   :  { %v316_v27 = vsel %vm74_vm2, %v314_v26, -inf }
 0x1ad   :  { %v318_v28 = vsel %vm317_vm3, %v316_v27, -inf  ;;  %492 = vmatpush.msra.mxu1 %v232_v3 }
 0x1ae   :  { %319 = vmax.xlane.f32.xlu0 %v318_v28 }
 0x221   :  { %v320_v29 = vpop.xlane.xlu0 %319 }
 0x222   :  { %v321_v30 = vsub.f32 %v316_v27, %v320_v29 }
 0x224   :  { %v322_v31 = vmul.f32 1.442695, %v321_v30 }
 0x226   :  { %570 = vpow2.f32 %v322_v31 }
 0x22c   :  { %v571_v33 = vpop.eup %570 }
 0x22d   :  { %v324_v14 = vsel %vm317_vm3, %v571_v33, 0.0 }
 0x22e   :  { %325 = vadd.xlane.f32.xlu1 %v324_v14 }
 0x2a1   :  { %v326_v2 = vpop.xlane.xlu1 %325 }
 0x2a2   :  { %572 = vrcp.f32 %v326_v2 }
 0x2a8   :  { %v573_v35 = vpop.eup %572 }
 0x2a9   :  { %v328_v36 = vmul.f32 %v573_v35, %v326_v2 }
 0x2ab   :  { %v329_v38 = vsub.f32 2.0, %v328_v36 }
 0x2ad   :  { %v330_v40 = vmul.f32 %v573_v35, %v329_v38 }
 0x2af   :  { %v331_v42 = vmul.f32 %v571_v33, %v330_v40 }
 0x2b1   :  { %332 = vst.msk [vmem:[#allocation10] sm:$0xff] %vm317_vm3, %v331_v42  ;;  %v347_v43 = vperm.slane %v331_v42, 2  ;;  %v340_v45 = vperm.slane %v331_v42, 1  ;;  %v333_v46 = vperm.slane %v331_v42, 0  ;;  %v368_v48 = vperm.slane %v331_v42, 5 }
 0x2b2   :  { %v354_v49 = vperm.slane %v331_v42, 3  ;;  %v361_v50 = vperm.slane %v331_v42, 4  ;;  %v375_v51 = vperm.slane %v331_v42, 6  ;;  %v382_v53 = vperm.slane %v331_v42, 7  ;;  %519 = dma.vmem_to_hbm [thread:$0]  %s515_s18, 128, %s517_s21, [#allocation11]  }
 0x2b3   :  { %352 = vperm.xlu1 %566, %v347_v43   ;;  %345 = vperm.xlu0 %565, %v340_v45  }
 0x2b4   :  { %338 = vperm.xlu2 %567, %v333_v46  }
 0x2bb   :  { %373 = vperm.xlu1 %566, %v368_v48   ;;  %359 = vperm.xlu0 %565, %v354_v49  }
 0x2bc   :  { %366 = vperm.xlu2 %567, %v361_v50  }
 0x2c3   :  { %380 = vperm.xlu0 %565, %v375_v51  }
 0x2c4   :  { %387 = vperm.xlu2 %567, %v382_v53  }
 0x30e   :  { %v339_v54 = vpop.permute.xlu2 %338 }
 0x30f   :  { %v389_v58 = vmul.f32 %v339_v54, %v792_v34 }
 0x311   :  { %v397_v61 = vsel %vm251_vm10, %v389_v58, 0.0 }
 0x312   :  { %v398_v0 = vrot.slane %v397_v61, 4 }
 0x314   :  { %v399_v8 = vadd.f32 %v398_v0, %v397_v61 }
 0x316   :  { %v367_v56 = vpop.permute.xlu2 %366  ;;  %v400_v18 = vrot.slane %v399_v8, 2 }
 0x317   :  { %v393_v1 = vmul.f32 %v367_v56, %v796_v37 }
 0x318   :  { %v401_v26 = vadd.f32 %v400_v18, %v399_v8 }
 0x319   :  { %v425_v9 = vsel %vm251_vm10, %v393_v1, 0.0 }
 0x31a   :  { %v426_v15 = vrot.slane %v425_v9, 4  ;;  %v402_v36 = vrot.slane %v401_v26, 1 }
 0x31c   :  { %v427_v24 = vadd.f32 %v426_v15, %v425_v9  ;;  %v403_v49 = vadd.f32 %v402_v36, %v401_v26 }
 0x31e   :  { %v388_v6 = vpop.permute.xlu2 %387  ;;  %v428_v14 = vrot.slane %v427_v24, 2 }
 0x31f   :  { %v396_v12 = vmul.f32 %v388_v6, %v816_v52 }
 0x320   :  { %v429_v46 = vadd.f32 %v428_v14, %v427_v24 }
 0x322   :  { %v430_v58 = vrot.slane %v429_v46, 1 }
 0x324   :  { %v431_v1 = vadd.f32 %v430_v58, %v429_v46 }
 0x325   :  { %v353_v4 = vpop.permute.xlu1 %352  ;;  %v346_v5 = vpop.permute.xlu0 %345 }
 0x326   :  { %v391_v34 = vmul.f32 %v353_v4, %v810_v47  ;;  %v390_v7 = vmul.f32 %v346_v5, %v799_v39  ;;  %v446_v47 = vsel %vm251_vm10, %v396_v12, 0.0  ;;  %v569_v12 = vld [vmem:[%s882_s5] ss:$0 sm:$0xff] }
 0x327   :  { %v447_v52 = vrot.slane %v446_v47, 4 }
 0x328   :  { %v411_v10 = vsel %vm251_vm10, %v391_v34, 0.0  ;;  %v404_v11 = vsel %vm251_vm10, %v390_v7, 0.0 }
 0x329   :  { %v412_v37 = vrot.slane %v411_v10, 4  ;;  %v405_v13 = vrot.slane %v404_v11, 4  ;;  %v448_v38 = vadd.f32 %v447_v52, %v446_v47 }
 0x32b   :  { %v413_v16 = vadd.f32 %v412_v37, %v411_v10  ;;  %v406_v17 = vadd.f32 %v405_v13, %v404_v11  ;;  %v449_v50 = vrot.slane %v448_v38, 2 }
 0x32d   :  { %v414_v19 = vrot.slane %v413_v16, 2  ;;  %v407_v39 = vrot.slane %v406_v17, 2  ;;  %v374_v20 = vpop.permute.xlu1 %373  ;;  %v360_v21 = vpop.permute.xlu0 %359  ;;  %v450_v61 = vadd.f32 %v449_v50, %v448_v38 }
 0x32e   :  { %v394_v22 = vmul.f32 %v374_v20, %v806_v44  ;;  %v392_v23 = vmul.f32 %v360_v21, %v787_v32 }
 0x32f   :  { %v408_v25 = vadd.f32 %v407_v39, %v406_v17  ;;  %v415_v29 = vadd.f32 %v414_v19, %v413_v16  ;;  %v451_v4 = vrot.slane %v450_v61, 1 }
 0x330   :  { %v432_v27 = vsel %vm251_vm10, %v394_v22, 0.0  ;;  %v418_v28 = vsel %vm251_vm10, %v392_v23, 0.0 }
 0x331   :  { %v433_v30 = vrot.slane %v432_v27, 4  ;;  %v419_v31 = vrot.slane %v418_v28, 4  ;;  %v409_v33 = vrot.slane %v408_v25, 1  ;;  %v416_v44 = vrot.slane %v415_v29, 1 }
 0x332   :  { %v452_v8 = vadd.f32 %v451_v4, %v450_v61 }
 0x333   :  { %v434_v2 = vadd.f32 %v433_v30, %v432_v27  ;;  %v420_v35 = vadd.f32 %v419_v31, %v418_v28  ;;  %v410_v42 = vadd.f32 %v409_v33, %v408_v25  ;;  %v417_v53 = vadd.f32 %v416_v44, %v415_v29 }
 0x335   :  { %v421_v40 = vrot.slane %v420_v35, 2  ;;  %v381_v32 = vpop.permute.xlu0 %380  ;;  %v435_v43 = vrot.slane %v434_v2, 2  ;;  %v464_v56 = vsel %vm301_vm11, %v410_v42, %v403_v49 }
 0x336   :  { %v395_v45 = vmul.f32 %v381_v32, %v802_v41  ;;  %v465_v63 = vsel %vm303_vm12, %v417_v53, %v464_v56 }
 0x337   :  { %v422_v48 = vadd.f32 %v421_v40, %v420_v35  ;;  %v436_v57 = vadd.f32 %v435_v43, %v434_v2 }
 0x338   :  { %v439_v51 = vsel %vm251_vm10, %v395_v45, 0.0 }
 0x339   :  { %v423_v54 = vrot.slane %v422_v48, 1  ;;  %v440_v55 = vrot.slane %v439_v51, 4  ;;  %v437_v41 = vrot.slane %v436_v57, 1 }
 0x33b   :  { %v424_v59 = vadd.f32 %v423_v54, %v422_v48  ;;  %v441_v60 = vadd.f32 %v440_v55, %v439_v51  ;;  %v438_v34 = vadd.f32 %v437_v41, %v436_v57 }
 0x33d   :  { %v442_v62 = vrot.slane %v441_v60, 2  ;;  %v466_v0 = vsel %vm305_vm13, %v424_v59, %v465_v63 }
 0x33e   :  { %v467_v6 = vsel %vm307_vm14, %v431_v1, %v466_v0 }
 0x33f   :  { %v443_v3 = vadd.f32 %v442_v62, %v441_v60  ;;  %v468_v9 = vsel %vm309_vm15, %v438_v34, %v467_v6 }
 0x341   :  { %v444_v5 = vrot.slane %v443_v3, 1 }
 0x343   :  { %v445_v7 = vadd.f32 %v444_v5, %v443_v3 }
 0x345   :  { %v469_v10 = vsel %vm311_vm0, %v445_v7, %v468_v9 }
 0x346   :  { %v470_v11 = vsel %vm313_vm1, %v452_v8, %v469_v10 }
 0x347   :  { %550 = vmatmul.msk.f32.vlgmr.msra.gmra.mxu1 %vm251_vm10, %v470_v11 }
 0x3c4   :  { %v494_v37 = vpop.f32.mrf.mxu1 }
 0x3c5   :  { %v495_v13 = vadd.f32 %v569_v12, %v494_v37 }
 0x3c7   :  { %497 = vst [vmem:[#allocation9] sm:$0xff] %v495_v13 }
 0x3c8   :  { %508 = dma.vmem_to_hbm [thread:$0]  %s504_s25, 128, %s506_s28, [#allocation5]  }
 0x3c9   :  { %698 = dma.done.wait [#allocation5], 128  }
 0x3ca   :  { %699 = vsyncadd [#allocation5], 4294967168 }
 0x3cb   :  { %700 = dma.done.wait [#allocation11], 128  }
 0x3cc   :  { %701 = vsyncadd [#allocation11], 4294967168 }
 0x3cd   :  { %528 = vsyncpa [#allocation4], 1 }
 0x3ce   :  { %529 = vsyncpa [#allocation7], 1 }
 0x3cf   :  { %530 = vsyncpa [#allocation5], 1 }
 0x3d0   :  { %531 = vsyncpa [#allocation11], 1 }

</bundles_post_ra>
